<compile_context>
chip_gen: v6e
topology: v6e:2x2x1
jax: 0.10.0
libtpu: 0.0.40
codegen_flags: <defaults>
</compile_context>

<pallas_src>
import jax
import jax.numpy as jnp
from jax.experimental import pallas as pl
from jax.experimental.pallas import tpu as pltpu


def _drop_path_kernel(x_ref, scale_ref, o_ref):
    # x_ref / o_ref: (TILE_N, TILE_D) slab of the flattened features.
    # scale_ref:     (TILE_N, 1) float32 per-sample scale (0 or 1/keep_prob).
    x = x_ref[...].astype(jnp.float32)            # no-op for f32 inputs
    o_ref[...] = (x * scale_ref[...]).astype(o_ref.dtype)


def _choose_tiles(n, d, itemsize):
    """Pick (tile_n, tile_d): lane-dense, ~4 MiB per x block, dtype-aware sublanes."""
    sub = {4: 8, 2: 16, 1: 32}.get(itemsize, 8)   # sublane granularity per dtype
    # Feature (lane) axis: whole D when modest (full array dim is always a legal
    # block dim, no (8,128) divisibility needed), else a big lane-dense tile.
    if d <= 4096:
        tile_d = d
    else:
        tile_d = 2048                             # multiple of 128
    # Batch (sublane) axis: multiple of `sub`, sized so one x block is ~4 MiB.
    # Double-buffered (in + out) that is ~16 MiB, within the 32 MiB scoped VMEM
    # default and the v7x 64 MiB physical budget.
    target_bytes = 4 * 1024 * 1024
    tile_n = max(sub, (target_bytes // max(1, tile_d * itemsize)) // sub * sub)
    if n <= tile_n:
        # Single batch block: either the exact N (full-dim block, always legal)
        # or round up to the sublane granularity (ragged rows handled by masks).
        tile_n = n if n <= sub else ((n + sub - 1) // sub) * sub
    return tile_n, tile_d


def drop_path_pallas(x, key, drop_prob=0.0, training=False, donate_x=False):
    """Pallas DropPath. x may have any rank >= 1; first axis is the batch axis."""
    if drop_prob == 0.0 or not training:
        return x

    keep_prob = 1.0 - float(drop_prob)
    n = x.shape[0]
    d = 1
    for s in x.shape[1:]:
        d *= s

    x_flat = x.reshape(n, d)
    itemsize = jnp.dtype(x.dtype).itemsize
    tile_n, tile_d = _choose_tiles(n, d, itemsize)
    grid = (pl.cdiv(n, tile_n), pl.cdiv(d, tile_d))

    # Per-sample decision computed once, in float32 (exact w.r.t. the floor
    # threshold even for bf16/fp16 inputs), with 1/keep_prob folded in.
    rand = jax.random.uniform(key, (n, 1), dtype=jnp.float32)
    scale = jnp.floor(keep_prob + rand) * (1.0 / keep_prob)     # (N, 1) f32

    out_flat = pl.pallas_call(
        _drop_path_kernel,
        out_shape=jax.ShapeDtypeStruct((n, d), x.dtype),
        grid_spec=pltpu.PrefetchScalarGridSpec(
            num_scalar_prefetch=0,
            grid=grid,
            in_specs=[
                pl.BlockSpec((tile_n, tile_d), lambda i, j: (i, j)),  # x slab
                pl.BlockSpec((tile_n, 1), lambda i, j: (i, 0)),       # per-sample scale
            ],
            out_specs=pl.BlockSpec((tile_n, tile_d), lambda i, j: (i, j)),
        ),
        compiler_params=pltpu.CompilerParams(
            dimension_semantics=("parallel", "parallel"),
            vmem_limit_bytes=32 * 1024 * 1024,
        ),
        input_output_aliases=({0: 0} if donate_x else {}),
    )(x_flat, scale)

    return out_flat.reshape(x.shape)


def _drop_path_ref(x, key, drop_prob, training):
    """Pure-JAX reference mirroring the PyTorch code (mask decided in f32)."""
    if drop_prob == 0.0 or not training:
        return x
    keep_prob = 1.0 - drop_prob
    shape = (x.shape[0],) + (1,) * (x.ndim - 1)
    rand = jax.random.uniform(key, (x.shape[0], 1), dtype=jnp.float32)
    mask = jnp.floor(keep_prob + rand).reshape(shape)
    return ((x.astype(jnp.float32) / keep_prob) * mask).astype(x.dtype)


if __name__ == "__main__":
    key = jax.random.PRNGKey(0)
    k_x, k_drop, k_x2, k_drop2 = jax.random.split(key, 4)

    # Primary case: NCHW input as the PyTorch module would see it.
    x = jax.random.normal(k_x, (2, 4, 16, 16), dtype=jnp.float32)
    drop_prob = 0.3

    out = drop_path_pallas(x, k_drop, drop_prob=drop_prob, training=True)
    out = jax.block_until_ready(out)
    ref = _drop_path_ref(x, k_drop, drop_prob, True)
    assert out.shape == x.shape and out.dtype == x.dtype
    assert jnp.allclose(out, ref, atol=1e-6, rtol=1e-6), "f32 mismatch vs reference"

    # Eval / no-drop path: identity.
    out_eval = drop_path_pallas(x, k_drop, drop_prob=drop_prob, training=False)
    assert jnp.array_equal(jax.block_until_ready(out_eval), x)

    # Ragged tiling case: N and D not multiples of the chosen tiles
    # (exercises masked ragged blocks on both grid axes, no pad/slice copies).
    x2 = jax.random.normal(k_x2, (12, 8, 24, 24), dtype=jnp.float32)
    out2 = drop_path_pallas(x2, k_drop2, drop_prob=0.5, training=True)
    out2 = jax.block_until_ready(out2)
    ref2 = _drop_path_ref(x2, k_drop2, 0.5, True)
    assert jnp.allclose(out2, ref2, atol=1e-6, rtol=1e-6), "ragged mismatch vs reference"

    # bf16 input: mask decision is made in f32, so it matches the f32 reference mask.
    xb = x.astype(jnp.bfloat16)
    outb = drop_path_pallas(xb, k_drop, drop_prob=drop_prob, training=True)
    outb = jax.block_until_ready(outb)
    refb = _drop_path_ref(xb, k_drop, drop_prob, True)
    assert outb.dtype == jnp.bfloat16
    assert jnp.allclose(outb.astype(jnp.float32), refb.astype(jnp.float32),
                        atol=1e-2, rtol=1e-2), "bf16 mismatch vs reference"

    print("KERNEL_OK")
</pallas_src>

<mosaic_0001>
module attributes {stable_mosaic.version = 11 : i64} {
  func.func @_drop_path_kernel(%arg0: i32, %arg1: i32, %arg2: memref<2x1024xf32, #tpu.memory_space<vmem>>, %arg3: memref<2x1xf32, #tpu.memory_space<vmem>>, %arg4: memref<2x1024xf32, #tpu.memory_space<vmem>>) attributes {dimension_semantics = [#tpu.dimension_semantics<parallel>, #tpu.dimension_semantics<parallel>], iteration_bounds = array<i64: 1, 1>, scalar_prefetch = 0 : i64, scratch_operands = 0 : i64, tpu.core_type = #tpu.core_type<tc>, window_params = [{transform_indices = @transform_0, window_bounds = array<i64: 2, 1024>}, {transform_indices = @transform_1, window_bounds = array<i64: 2, 1>}, {transform_indices = @transform_2, window_bounds = array<i64: 2, 1024>}]} {
    %c0 = arith.constant 0 : index
    %c0_0 = arith.constant 0 : index
    %0 = vector.load %arg2[%c0, %c0_0] : memref<2x1024xf32, #tpu.memory_space<vmem>>, vector<2x1024xf32>
    %c0_1 = arith.constant 0 : index
    %c0_2 = arith.constant 0 : index
    %1 = vector.load %arg3[%c0_1, %c0_2] : memref<2x1xf32, #tpu.memory_space<vmem>>, vector<2x1xf32>
    %2 = vector.broadcast %1 : vector<2x1xf32> to vector<2x1024xf32>
    %3 = arith.mulf %0, %2 : vector<2x1024xf32>
    %c0_3 = arith.constant 0 : index
    %c0_4 = arith.constant 0 : index
    %4 = vector.load %arg4[%c0_3, %c0_4] : memref<2x1024xf32, #tpu.memory_space<vmem>>, vector<2x1024xf32>
    tpu.vector_store %arg4[%c0_3, %c0_4], %3 {strides = array<i32>} : memref<2x1024xf32, #tpu.memory_space<vmem>>, vector<2x1024xf32>,
    return
  }
  func.func @transform_0(%arg0: i32, %arg1: i32) -> (i32, i32) {
    %c0_i32 = arith.constant 0 : i32
    return %arg0, %arg1 : i32, i32
  }
  func.func @transform_1(%arg0: i32, %arg1: i32) -> (i32, i32) {
    %c0_i32 = arith.constant 0 : i32
    %c0_i32_0 = arith.constant 0 : i32
    return %arg0, %c0_i32 : i32, i32
  }
  func.func @transform_2(%arg0: i32, %arg1: i32) -> (i32, i32) {
    %c0_i32 = arith.constant 0 : i32
    return %arg0, %arg1 : i32, i32
  }
}

</mosaic_0001>

<bundles_post_ra>
// kernel: tpu_custom_call.1
= control target key start
LH: loop header
LB: loop body
LE: loop exit
PB: predicated region body
PF: predicated region fallthrough
CT: control target
= control target key end

     0   :  { %7 = vsyncpa [#allocation3], 0  ;;  %s135_s0 = inlined_call_operand.hbm [shape: f32[2,1024], index: 0, kind: input, shape index: {}]   ;;  %s136_s1 = inlined_call_operand.vmem [shape: f32[2,1], index: 1, kind: input, shape index: {}]   ;;  %s137_s2 = inlined_call_operand.hbm [shape: f32[2,1024], index: 2, kind: output, shape index: {}]  }
   0x1   :  { %8 = vsyncpa [#allocation4], 0  ;;  %s107_s9 = smov [#allocation2]  }
   0x2   :  { %s15_s10 = sshll.u32 %s107_s9, 4  ;;  %s16_s10 = int_to_ptr.vmem [resolvable:$true] %s15_s10 }
   0x3   :  { %s71_s11 = scalar_lea.vmem %s16_s10, 256  ;;  %p76_p1 = scmp.lt.s32.totalorder %s16_s10, %s16_s10 }
   0x4   :  { %p72_p0 = scmp.ne.s32.totalorder %s16_s10, %s71_s11  ;;  %p77_p2 = scmp.lt.s32.totalorder %s71_s11, %s71_s11 }
   0x6   :  { %p78_p3 = por %p77_p2, %p76_p1 }
   0x8   :  { %p79_p4 = pnand %p78_p3, %p72_p0 }
   0xa   :  { %82 = shalt.err (!%p79_p4)
}
   0xb   :  { %18 = dma.hbm_to_vmem [thread:$0]  %s135_s0, 256, %s16_s10, [#allocation3]  }
   0xc   :  { %103 = dma.done.wait [#allocation3], 256  }
   0xd   :  { %104 = vsyncadd [#allocation3], 4294967040  ;;  %v108_v0 = vmov 0   ;;  %v26_v1 = vld [vmem:[%s136_s1] sm:$0x3]  ;;  %v34_v4 = vlaneseq  ;;  %v25_v10 = vld [vmem:[#allocation2 + $0x8] sm:$0xff] }
   0xe   :  { %62 = vset.pattern.permute.xlu0 %v108_v0  ;;  %v109_v2 = vmov 269488144   ;;  %v24_v9 = vld [vmem:[#allocation2] sm:$0xff]  ;;  %s110_s16 = smov [#allocation5]  }
   0xf   :  { %29 = vperm.xlu0 %62, %v26_v1   ;;  %v32_v3 = vunpack.c.l.s4 %v109_v2  ;;  %v35_v6 = vshrl.u32 %v34_v4, 7  ;;  %s49_s0 = sshll.u32 %s110_s16, 4  ;;  %s50_s0 = int_to_ptr.vmem [resolvable:$true] %s49_s0 }
  0x10   :  { %s83_s17 = scalar_lea.vmem %s50_s0, 256  ;;  %p88_p6 = scmp.lt.s32.totalorder %s50_s0, %s50_s0 }
  0x11   :  { %v33_v5 = vunpack.c.0.s8 %v32_v3  ;;  %p84_p5 = scmp.ne.s32.totalorder %s50_s0, %s83_s17  ;;  %p89_p7 = scmp.lt.s32.totalorder %s83_s17, %s83_s17 }
  0x13   :  { %v36_v7 = vsub.s32 %v33_v5, %v35_v6  ;;  %p90_p8 = por %p89_p7, %p88_p6 }
  0x15   :  { %p91_p9 = pnand %p90_p8, %p84_p5 }
  0x8a   :  { %v30_v8 = vpop.permute.xlu0 %29 }
  0x8b   :  { %v37_v11 = vrot.slane %v30_v8, %v36_v7 }
  0x8d   :  { %v39_v12 = vmul.f32 %v37_v11, %v24_v9  ;;  %v40_v13 = vmul.f32 %v37_v11, %v25_v10 }
  0x8f   :  { %41 = vst [vmem:[#allocation5] sm:$0xff] %v39_v12  ;;  %42 = vst [vmem:[#allocation5 + $0x8] sm:$0xff] %v40_v13 }
  0x90   :  { %94 = shalt.err (!%p91_p9)
}
  0x91   :  { %52 = dma.vmem_to_hbm [thread:$0]  %s50_s0, 256, %s137_s2, [#allocation4]  }
  0x92   :  { %105 = dma.done.wait [#allocation4], 256  }
  0x93   :  { %106 = vsyncadd [#allocation4], 4294967040 }
  0x94   :  { %56 = vsyncpa [#allocation3], 1 }
  0x95   :  { %57 = vsyncpa [#allocation4], 1 }

</bundles_post_ra>
